<compile_context>
chip_gen: v5e
topology: v5e:2x2
jax: 0.10.0
libtpu: 0.0.40
codegen_flags: <defaults>
</compile_context>

<pallas_src>
import jax
import jax.numpy as jnp
from jax.experimental import pallas as pl
from jax.experimental.pallas import tpu as pltpu

_LANE_CANDIDATES = (1024, 512, 256, 128)
# Elements per block: ~2 MiB for f32. With 2 input + 2 output pipeline buffers
# that is ~8 MiB of VMEM, safe on v5e (16 MiB scoped default), v6e and v7x.
_MAX_BLOCK_ELEMS = 512 * 1024


def _serf_kernel(x_ref, o_ref):
    # Compute in f32 for accuracy (a no-op cast when the input is already f32;
    # keeps softplus/erf precise for bf16 callers too, and v5e has no bf16 VPU).
    x = x_ref[...].astype(jnp.float32)
    # numerically-stable softplus: log(1 + exp(x)) = max(x, 0) + log1p(exp(-|x|))
    sp = jnp.maximum(x, 0.0) + jnp.log1p(jnp.exp(-jnp.abs(x)))
    o_ref[...] = (jax.lax.erf(sp) * x).astype(o_ref.dtype)


def serf(x: jax.Array) -> jax.Array:
    """Elementwise Serf activation via a Pallas TPU kernel. Works for any shape."""
    orig_shape = x.shape
    orig_dtype = x.dtype

    flat = x.reshape(-1)
    n = flat.shape[0]

    # Pick the widest lane-dense last dim that exactly divides n.
    lane = None
    for cand in _LANE_CANDIDATES:
        if n % cand == 0:
            lane = cand
            break

    n_used = n
    if lane is None:
        # Rare unaligned fallback: pad up to a multiple of 128. serf(0) == 0,
        # so padded lanes are harmless and sliced off afterwards.
        lane = 128
        n_used = pl.cdiv(n, lane) * lane
        flat = jnp.pad(flat, (0, n_used - n))

    x2d = flat.reshape(-1, lane)
    rows = x2d.shape[0]

    max_rows_per_block = max(_MAX_BLOCK_ELEMS // lane, 8)  # multiple of 8
    if rows <= max_rows_per_block:
        # Single full-extent block: grid of 1, no divisibility constraints.
        block_rows = rows
        grid = (1,)
    else:
        block_rows = max_rows_per_block
        # Partial edge block (if any) is masked by Pallas — no pad/slice pass.
        grid = (pl.cdiv(rows, block_rows),)

    out2d = pl.pallas_call(
        _serf_kernel,
        out_shape=jax.ShapeDtypeStruct((rows, lane), orig_dtype),
        grid_spec=pltpu.PrefetchScalarGridSpec(
            num_scalar_prefetch=0,
            grid=grid,
            in_specs=[pl.BlockSpec((block_rows, lane), lambda i: (i, 0))],
            out_specs=pl.BlockSpec((block_rows, lane), lambda i: (i, 0)),
        ),
        compiler_params=pltpu.CompilerParams(
            # Independent row-blocks: shards across both TensorCores on v7x,
            # measured no-op on single-TC v5e/v6e.
            dimension_semantics=("parallel",),
        ),
    )(x2d)

    out_flat = out2d.reshape(-1)
    if n_used != n:
        out_flat = out_flat[:n]
    return out_flat.reshape(orig_shape)


def _serf_ref(x):
    # pure-JAX reference: erf(softplus(x)) * x
    xf = x.astype(jnp.float32)
    return jax.lax.erf(jax.nn.softplus(xf)) * xf


if __name__ == "__main__":
    key = jax.random.PRNGKey(0)
    # NCHW input, same convention as the PyTorch module would receive.
    x = jax.random.normal(key, (2, 4, 16, 16), dtype=jnp.float32)

    y = serf(x)
    jax.block_until_ready(y)

    y_ref = _serf_ref(x)
    assert y.shape == x.shape and y.dtype == x.dtype
    assert jnp.allclose(y, y_ref, atol=1e-5, rtol=1e-5)

    print("KERNEL_OK")
</pallas_src>

<mosaic_0001>
module attributes {stable_mosaic.version = 11 : i64} {
  func.func @_serf_kernel(%arg0: i32, %arg1: memref<2x1024xf32, #tpu.memory_space<vmem>>, %arg2: memref<2x1024xf32, #tpu.memory_space<vmem>>) attributes {dimension_semantics = [#tpu.dimension_semantics<parallel>], iteration_bounds = array<i64: 1>, scalar_prefetch = 0 : i64, scratch_operands = 0 : i64, tpu.core_type = #tpu.core_type<tc>, window_params = [{transform_indices = @transform_0, window_bounds = array<i64: 2, 1024>}, {transform_indices = @transform_1, window_bounds = array<i64: 2, 1024>}]} {
    %c0 = arith.constant 0 : index
    %c0_0 = arith.constant 0 : index
    %0 = vector.load %arg1[%c0, %c0_0] : memref<2x1024xf32, #tpu.memory_space<vmem>>, vector<2x1024xf32>
    %cst = arith.constant 0.000000e+00 : f32
    %1 = vector.broadcast %cst : f32 to vector<2x1024xf32>
    %2 = arith.maximumf %0, %1 : vector<2x1024xf32>
    %3 = math.absf %0 : vector<2x1024xf32>
    %cst_1 = arith.constant 0.000000e+00 : f32
    %4 = vector.broadcast %cst_1 : f32 to vector<2x1024xf32>
    %5 = arith.subf %4, %3 : vector<2x1024xf32>
    %6 = math.exp %5 : vector<2x1024xf32>
    %7 = math.log1p %6 : vector<2x1024xf32>
    %8 = arith.addf %2, %7 : vector<2x1024xf32>
    %9 = math.erf %8 : vector<2x1024xf32>
    %10 = arith.mulf %9, %0 : vector<2x1024xf32>
    %c0_2 = arith.constant 0 : index
    %c0_3 = arith.constant 0 : index
    %11 = vector.load %arg2[%c0_2, %c0_3] : memref<2x1024xf32, #tpu.memory_space<vmem>>, vector<2x1024xf32>
    tpu.vector_store %arg2[%c0_2, %c0_3], %10 {strides = array<i32>} : memref<2x1024xf32, #tpu.memory_space<vmem>>, vector<2x1024xf32>,
    return
  }
  func.func @transform_0(%arg0: i32) -> (i32, i32) {
    %c0_i32 = arith.constant 0 : i32
    %c0_i32_0 = arith.constant 0 : i32
    return %arg0, %c0_i32 : i32, i32
  }
  func.func @transform_1(%arg0: i32) -> (i32, i32) {
    %c0_i32 = arith.constant 0 : i32
    %c0_i32_0 = arith.constant 0 : i32
    return %arg0, %c0_i32 : i32, i32
  }
}

</mosaic_0001>

<bundles_post_ra>
// kernel: tpu_custom_call.1
= control target key start
LH: loop header
LB: loop body
LE: loop exit
PB: predicated region body
PF: predicated region fallthrough
CT: control target
= control target key end

     0   :  { %6 = vsyncpa [#allocation3], 0  ;;  %s262_s0 = inlined_call_operand.hbm [shape: f32[2,1024], index: 0, kind: input, shape index: {}]   ;;  %s263_s1 = inlined_call_operand.hbm [shape: f32[2,1024], index: 1, kind: output, shape index: {}]  }
   0x1   :  { %7 = vsyncpa [#allocation4], 0  ;;  %s13_s8 = sshll.u32 %s262_s0, 4  ;;  %s224_s9 = smov [#allocation2]   ;;  %s14_s8 = int_to_ptr.hbm [resolvable:$true] %s13_s8 }
   0x2   :  { %s15_s10 = sshll.u32 %s224_s9, 4  ;;  %s16_s10 = int_to_ptr.vmem [resolvable:$true] %s15_s10 }
   0x3   :  { %18 = dma.hbm_to_vmem [thread:$0]  %s14_s8, 256, %s16_s10, [#allocation3]  }
   0x4   :  { %220 = dma.done.wait [#allocation3], 256  }
   0x5   :  { %221 = vsyncadd [#allocation3], 4294967040  ;;  %v239_v0 = vld [vmem:[#allocation2] sm:$0xff]  ;;  %v241_v1 = vld [vmem:[#allocation2 + $0x8] sm:$0xff]  ;;  %s225_s0 = smov [#allocation5]   ;;  %s146_s14 = sshll.u32 %s263_s1, 4  ;;  %s147_s14 = int_to_ptr.hbm [resolvable:$true] %s146_s14 }
   0x6   :  { %v27_v2 = vand.u32 2147483647, %v239_v0  ;;  %v28_v3 = vand.u32 2147483647, %v241_v1  ;;  %v25_v20 = vmax.f32 %v239_v0, 0.0  ;;  %v26_v24 = vmax.f32 %v241_v1, 0.0 }
   0x7   :  { %s144_s11 = sshll.u32 %s225_s0, 4  ;;  %s145_s11 = int_to_ptr.vmem [resolvable:$true] %s144_s11 }
   0x8   :  { %v29_v4 = vsub.f32 0.0, %v27_v2  ;;  %v30_v5 = vsub.f32 0.0, %v28_v3 }
   0xa   :  { %v31_v6 = vmul.f32 1.442695, %v29_v4  ;;  %v33_v7 = vmul.f32 1.442695, %v30_v5 }
   0xc   :  { %160 = vpow2.f32 %v31_v6 }
   0xd   :  { %162 = vpow2.f32 %v33_v7 }
  0x12   :  { %v161_v8 = vpop.eup %160 }
  0x13   :  { %v163_v9 = vpop.eup %162  ;;  %v35_v10 = vadd.f32 1.0, %v161_v8  ;;  %v38_v11 = vmul.f32 -0.5, %v161_v8  ;;  %v41_v15 = vand.u32 2147483647, %v161_v8 }
  0x14   :  { %v44_v12 = vadd.f32 1.0, %v163_v9  ;;  %v47_v13 = vmul.f32 -0.5, %v163_v9  ;;  %v50_v17 = vand.u32 2147483647, %v163_v9 }
  0x15   :  { %164 = vlog2.f32 %v35_v10  ;;  %v39_v14 = vadd.f32 1.0, %v38_v11  ;;  %vm42_vm0 = vcmp.lt.f32.partialorder %v41_v15, 0.0004427343 }
  0x16   :  { %166 = vlog2.f32 %v44_v12  ;;  %v48_v16 = vadd.f32 1.0, %v47_v13  ;;  %vm51_vm1 = vcmp.lt.f32.partialorder %v50_v17, 0.0004427343 }
  0x17   :  { %v40_v18 = vmul.f32 %v161_v8, %v39_v14 }
  0x18   :  { %v49_v21 = vmul.f32 %v163_v9, %v48_v16 }
  0x1b   :  { %v165_v19 = vpop.eup %164 }
  0x1c   :  { %v167_v22 = vpop.eup %166  ;;  %v37_v23 = vmul.f32 0.6931472, %v165_v19 }
  0x1d   :  { %v46_v25 = vmul.f32 0.6931472, %v167_v22 }
  0x1e   :  { %v43_v26 = vsel %vm42_vm0, %v40_v18, %v37_v23 }
  0x1f   :  { %v247_v27 = vadd.f32 %v43_v26, %v25_v20  ;;  %v52_v28 = vsel %vm51_vm1, %v49_v21, %v46_v25 }
  0x20   :  { %v249_v29 = vadd.f32 %v52_v28, %v26_v24 }
  0x21   :  { %v55_v30 = vmul.f32 %v247_v27, %v247_v27 }
  0x22   :  { %v95_v31 = vmul.f32 %v249_v29, %v249_v29 }
  0x23   :  { %v56_v32 = vmin.f32 %v55_v30, 16.0 }
  0x24   :  { %v96_v33 = vmin.f32 %v95_v31, 16.0 }
  0x25   :  { %v57_v34 = vmul.f32 2.1237322e-06, %v56_v32  ;;  %v68_v35 = vmul.f32 3.8918573e-05, %v56_v32 }
  0x26   :  { %v97_v36 = vmul.f32 2.1237322e-06, %v96_v33  ;;  %v108_v37 = vmul.f32 3.8918573e-05, %v96_v33 }
  0x27   :  { %v58_v38 = vadd.f32 0.00028619796, %v57_v34  ;;  %v69_v39 = vadd.f32 0.001143296, %v68_v35 }
  0x28   :  { %v98_v40 = vadd.f32 0.00028619796, %v97_v36  ;;  %v109_v41 = vadd.f32 0.001143296, %v108_v37 }
  0x29   :  { %v59_v42 = vmul.f32 %v58_v38, %v56_v32  ;;  %v70_v43 = vmul.f32 %v69_v39, %v56_v32 }
  0x2a   :  { %v99_v44 = vmul.f32 %v98_v40, %v96_v33  ;;  %v110_v45 = vmul.f32 %v109_v41, %v96_v33 }
  0x2b   :  { %v60_v46 = vadd.f32 0.0036580483, %v59_v42  ;;  %v71_v47 = vadd.f32 0.014752088, %v70_v43 }
  0x2c   :  { %v100_v48 = vadd.f32 0.0036580483, %v99_v44  ;;  %v111_v49 = vadd.f32 0.014752088, %v110_v45 }
  0x2d   :  { %v61_v50 = vmul.f32 %v60_v46, %v56_v32  ;;  %v72_v51 = vmul.f32 %v71_v47, %v56_v32 }
  0x2e   :  { %v101_v52 = vmul.f32 %v100_v48, %v96_v33  ;;  %v112_v53 = vmul.f32 %v111_v49, %v96_v33 }
  0x2f   :  { %v73_v54 = vadd.f32 0.112945676, %v72_v51  ;;  %v62_v55 = vadd.f32 0.05243302, %v61_v50 }
  0x30   :  { %v113_v56 = vadd.f32 0.112945676, %v112_v53  ;;  %v102_v58 = vadd.f32 0.05243302, %v101_v52 }
  0x31   :  { %v74_v57 = vmul.f32 %v73_v54, %v56_v32  ;;  %v63_v61 = vmul.f32 %v62_v55, %v56_v32 }
  0x32   :  { %v114_v59 = vmul.f32 %v113_v56, %v96_v33  ;;  %v103_v2 = vmul.f32 %v102_v58, %v96_v33 }
  0x33   :  { %v75_v60 = vadd.f32 0.4994258, %v74_v57  ;;  %v64_v5 = vadd.f32 0.18741608, %v63_v61 }
  0x34   :  { %v115_v62 = vadd.f32 0.4994258, %v114_v59  ;;  %v104_v7 = vadd.f32 0.18741608, %v103_v2 }
  0x35   :  { %v76_v63 = vmul.f32 %v75_v60, %v56_v32  ;;  %v65_v8 = vmul.f32 %v64_v5, %v56_v32 }
  0x36   :  { %v116_v3 = vmul.f32 %v115_v62, %v96_v33  ;;  %v105_v9 = vmul.f32 %v104_v7, %v96_v33 }
  0x37   :  { %v77_v4 = vadd.f32 1.0, %v76_v63  ;;  %v66_v12 = vadd.f32 1.1283791, %v65_v8 }
  0x38   :  { %v117_v6 = vadd.f32 1.0, %v116_v3  ;;  %v106_v15 = vadd.f32 1.1283791, %v105_v9 }
  0x39   :  { %168 = vrcp.f32 %v77_v4  ;;  %vm83_vm2 = vweird.f32 %v77_v4  ;;  %v89_v14 = vand.u32 2147483648, %v77_v4  ;;  %v87_v18 = vand.u32 2147483647, %v77_v4 }
  0x3a   :  { %170 = vrcp.f32 %v117_v6  ;;  %v129_v19 = vand.u32 2147483648, %v117_v6  ;;  %vm123_vm4 = vweird.f32 %v117_v6  ;;  %v127_v21 = vand.u32 2147483647, %v117_v6 }
  0x3b   :  { %v90_v23 = vor.u32 1.1754944e-38, %v89_v14  ;;  %v67_v25 = vmul.f32 %v66_v12, %v247_v27  ;;  %vm88_vm7 = vcmp.eq.f32.partialorder %v87_v18, 8.507059e+37  ;;  %v107_v30 = vmul.f32 %v106_v15, %v249_v29 }
  0x3c   :  { %v130_v28 = vor.u32 1.1754944e-38, %v129_v19  ;;  %vm128_vm9 = vcmp.eq.f32.partialorder %v127_v21, 8.507059e+37 }
  0x3f   :  { %v169_v10 = vpop.eup %168 }
  0x40   :  { %v171_v11 = vpop.eup %170  ;;  %v79_v13 = vmul.f32 %v169_v10, %v77_v4  ;;  %vm84_vm3 = vweird.f32 %v169_v10 }
  0x41   :  { %v119_v16 = vmul.f32 %v171_v11, %v117_v6  ;;  %vm124_vm5 = vweird.f32 %v171_v11  ;;  %vm85_vm6 = vmor %vm83_vm2, %vm84_vm3 }
  0x42   :  { %v80_v17 = vsub.f32 1.0, %v79_v13  ;;  %vm125_vm8 = vmor %vm123_vm4, %vm124_vm5 }
  0x43   :  { %v120_v20 = vsub.f32 1.0, %v119_v16 }
  0x44   :  { %v81_v22 = vmul.f32 %v169_v10, %v80_v17 }
  0x45   :  { %v121_v24 = vmul.f32 %v171_v11, %v120_v20 }
  0x46   :  { %v82_v26 = vadd.f32 %v169_v10, %v81_v22 }
  0x47   :  { %v122_v31 = vadd.f32 %v171_v11, %v121_v24 }
  0x48   :  { %v86_v32 = vsel %vm85_vm6, %v169_v10, %v82_v26 }
  0x49   :  { %v91_v33 = vsel %vm88_vm7, %v90_v23, %v86_v32  ;;  %v126_v34 = vsel %vm125_vm8, %v171_v11, %v122_v31 }
  0x4a   :  { %v92_v35 = vmul.f32 %v91_v33, %v67_v25  ;;  %v131_v36 = vsel %vm128_vm9, %v130_v28, %v126_v34 }
  0x4b   :  { %v132_v37 = vmul.f32 %v131_v36, %v107_v30 }
  0x4c   :  { %v156_v38 = vclamps-f32 %v92_v35, 1.0 }
  0x4d   :  { %v157_v27 = vclamps-f32 %v132_v37, 1.0 }
  0x4e   :  { %v135_v39 = vmul.f32 %v156_v38, %v239_v0 }
  0x4f   :  { %v136_v29 = vmul.f32 %v157_v27, %v241_v1 }
  0x50   :  { %137 = vst [vmem:[#allocation5] sm:$0xff] %v135_v39 }
  0x51   :  { %138 = vst [vmem:[#allocation5 + $0x8] sm:$0xff] %v136_v29 }
  0x52   :  { %149 = dma.vmem_to_hbm [thread:$0]  %s145_s11, 256, %s147_s14, [#allocation4]  }
  0x53   :  { %222 = dma.done.wait [#allocation4], 256  }
  0x54   :  { %223 = vsyncadd [#allocation4], 4294967040 }
  0x55   :  { %154 = vsyncpa [#allocation3], 1 }
  0x56   :  { %155 = vsyncpa [#allocation4], 1 }

</bundles_post_ra>
